<compile_context>
chip_gen: v7x
topology: tpu7x:2x2x1
jax: 0.10.0
libtpu: 0.0.40
codegen_flags: <defaults>
</compile_context>

<pallas_src>
import jax
import jax.numpy as jnp
from jax.experimental import pallas as pl
from jax.experimental.pallas import tpu as pltpu

N_CATEGORIES = 16   # len(all_categories)
LANE = 128
NEG_BIG = -1e30     # finite "minus infinity" folded into the padded bias lanes


def _round_up(x, m):
    return ((x + m - 1) // m) * m


# ---------------------------------------------------------------------------
# Fused kernel: non-recurrent projection + unrolled recurrence + batched o2o.
# ---------------------------------------------------------------------------
def make_fused_kernel(T, B):
    def fused_kernel(cat_ref, inp_ref, h0_ref,
                     wcat_ref, winp_ref, b1_ref, w1h_ref, w2_ref, b2_ref,
                     out_ref, comb_ref):
        # TODO(synk): nn.Dropout(0.1) train-mode RNG masking omitted; eval-mode
        # (identity) semantics are implemented, matching deterministic inference.

        # ---- Stage 0: non-recurrent projection, batched over all timesteps ----
        # category is constant across T: project it once (B rows, not T*B).
        cat_proj = (
            jnp.dot(cat_ref[...], wcat_ref[...], preferred_element_type=jnp.float32)
            + b1_ref[...]
        )                                                         # (B, HO_pad)
        inp_proj = jnp.dot(inp_ref[...], winp_ref[...],
                           preferred_element_type=jnp.float32)    # (T*B, HO_pad)

        # ---- Stage 1: serial recurrence, fully unrolled in-kernel -------------
        # Only the (B, HO_pad) x (HO_pad, HO_pad) hidden matmul sits on the
        # serial critical path; o2o matmul + log-softmax are batched below.
        w1h = w1h_ref[...]
        state = h0_ref[...]                                       # (B, HO_pad)
        comb_steps = []
        for t in range(T):                                        # static unroll
            proj_t = cat_proj + inp_proj[t * B:(t + 1) * B, :]
            combined = (
                jnp.dot(state, w1h, preferred_element_type=jnp.float32) + proj_t
            )
            comb_steps.append(combined)
            # Next hidden = combined[:, :H]; selected implicitly because rows
            # >= H of w1h are zero.
            state = combined
        comb_all = jnp.concatenate(comb_steps, axis=0)            # (T*B, HO_pad)
        comb_ref[...] = comb_all.astype(comb_ref.dtype)

        # ---- Stage 2: batched o2o matmul + log-softmax over M = T*B rows ------
        # Padded output lanes get ~-1e30 via b2, so the reductions ignore them
        # (no per-row iota/select needed).
        logits = (
            jnp.dot(comb_all, w2_ref[...], preferred_element_type=jnp.float32)
            + b2_ref[...]
        )                                                         # (T*B, O_pad)
        m = jnp.max(logits, axis=1, keepdims=True)
        shifted = logits - m
        lse = jnp.log(jnp.sum(jnp.exp(shifted), axis=1, keepdims=True))
        out_ref[...] = (shifted - lse).astype(out_ref.dtype)

    return fused_kernel


# ---------------------------------------------------------------------------
# Parameter handling
# ---------------------------------------------------------------------------
def init_params(key, input_size, hidden_size, output_size):
    """nn.Linear-style init: U(-1/sqrt(fan_in), 1/sqrt(fan_in)).
    Weights stored as (in_features, out_features) for x @ W."""
    dims = {
        "i2h": (N_CATEGORIES + input_size + hidden_size, hidden_size),
        "i2o": (N_CATEGORIES + input_size + hidden_size, output_size),
        "o2o": (hidden_size + output_size, output_size),
    }
    params = {}
    keys = jax.random.split(key, 6)
    for i, (name, (fan_in, fan_out)) in enumerate(dims.items()):
        bound = 1.0 / (fan_in ** 0.5)
        params[f"w_{name}"] = jax.random.uniform(
            keys[2 * i], (fan_in, fan_out), jnp.float32, -bound, bound)
        params[f"b_{name}"] = jax.random.uniform(
            keys[2 * i + 1], (1, fan_out), jnp.float32, -bound, bound)
    return params


def pack_params(params, input_size, hidden_size, output_size):
    """Fuse i2h/i2o, split category/input/recurrent rows, pad lanes to 128,
    fold the padded-lane softmax mask into the o2o bias."""
    C = N_CATEGORIES
    I = input_size
    H, O = hidden_size, output_size
    CI = C + I
    HO = H + O
    HO_pad = _round_up(HO, LANE)
    O_pad = _round_up(O, LANE)

    w1 = jnp.concatenate([params["w_i2h"], params["w_i2o"]], axis=1)   # (CI+H, HO)
    b1 = jnp.concatenate([params["b_i2h"], params["b_i2o"]], axis=1)   # (1, HO)

    w1_pad = jnp.zeros((CI + H, HO_pad), jnp.float32).at[:, :HO].set(w1)
    b1_pad = jnp.zeros((1, HO_pad), jnp.float32).at[:, :HO].set(b1)

    w_cat = w1_pad[:C]                 # (C, HO_pad)  category rows
    w_inp = w1_pad[C:CI]               # (I, HO_pad)  input rows
    # Recurrent part embedded at rows [0:H) of a (HO_pad, HO_pad) matrix so the
    # state (= previous combined, lane-padded) is directly usable as matmul LHS.
    w1_h_ext = jnp.zeros((HO_pad, HO_pad), jnp.float32).at[:H].set(w1_pad[CI:CI + H])

    w2_pad = jnp.zeros((HO_pad, O_pad), jnp.float32).at[:HO, :O].set(params["w_o2o"])
    # Padded-lane mask folded into the bias: W2's padded columns are zero, so the
    # padded logits become ~-1e30 and the log-softmax reductions ignore them.
    b2_pad = jnp.full((1, O_pad), NEG_BIG, jnp.float32).at[:, :O].set(params["b_o2o"])

    # TODO(synk): cast matmul operands to bf16 (keep f32 accumulate) on
    # v5e/v6e/v7x once accuracy tolerances allow; halves MXU passes per step.
    return {
        "w_cat": w_cat, "w_inp": w_inp, "b1": b1_pad, "w1_h": w1_h_ext,
        "w2": w2_pad, "b2": b2_pad,
        "C": C, "I": I, "H": H, "O": O, "HO_pad": HO_pad, "O_pad": O_pad,
    }


# ---------------------------------------------------------------------------
# Wrappers
# ---------------------------------------------------------------------------
def rnn_forward_seq(category, inputs, h0, packed):
    """Run the RNN cell over a (T, B, I) input sequence with a fixed category.

    Returns (log_probs (T, B, O), hiddens (T, B, H))."""
    T, B, I = inputs.shape
    H, O = packed["H"], packed["O"]
    HO_pad, O_pad = packed["HO_pad"], packed["O_pad"]

    inp_flat = inputs.reshape(T * B, I)
    h0_pad = jnp.zeros((B, HO_pad), jnp.float32).at[:, :H].set(h0)

    vmem = pl.BlockSpec(memory_space=pltpu.MemorySpace.VMEM)

    # TODO(synk): for large T*B (>~10-20k rows; v7x VMEM is 64 MiB) tile the
    # time axis with a grid + pipelined BlockSpecs instead of fully-resident.
    # TODO(synk): on v7x add a parallel batch-block grid axis once B >= 16 so
    # the second TensorCore is not idle.
    out_pad, comb = pl.pallas_call(
        make_fused_kernel(T, B),
        out_shape=(
            jax.ShapeDtypeStruct((T * B, O_pad), jnp.float32),
            jax.ShapeDtypeStruct((T * B, HO_pad), jnp.float32),
        ),
        in_specs=[vmem] * 9,
        out_specs=(vmem, vmem),
    )(category, inp_flat, h0_pad,
      packed["w_cat"], packed["w_inp"], packed["b1"],
      packed["w1_h"], packed["w2"], packed["b2"])

    out = out_pad.reshape(T, B, O_pad)[:, :, :O]
    hid = comb.reshape(T, B, HO_pad)[:, :, :H]
    return out, hid


def rnn_forward(category, inp, hidden, packed):
    """Single-step forward matching the PyTorch module signature:
    (category, input, hidden) -> (log_softmax output, new hidden).
    Now a single pallas_call (T=1)."""
    out_seq, hid_seq = rnn_forward_seq(category, inp[None], hidden, packed)
    return out_seq[0], hid_seq[0]


# ---------------------------------------------------------------------------
# Pure-JAX reference
# ---------------------------------------------------------------------------
def rnn_forward_ref(category, inp, hidden, params):
    xc = jnp.concatenate([category, inp, hidden], axis=1)
    h = xc @ params["w_i2h"] + params["b_i2h"]
    o = xc @ params["w_i2o"] + params["b_i2o"]
    oc = jnp.concatenate([h, o], axis=1)
    out = oc @ params["w_o2o"] + params["b_o2o"]
    out = jax.nn.log_softmax(out, axis=1)
    return out, h


def rnn_seq_ref(category, inputs, h0, params):
    outs, hids = [], []
    h = h0
    for t in range(inputs.shape[0]):
        o, h = rnn_forward_ref(category, inputs[t], h, params)
        outs.append(o)
        hids.append(h)
    return jnp.stack(outs), jnp.stack(hids)


# ---------------------------------------------------------------------------
if __name__ == "__main__":
    key = jax.random.PRNGKey(0)
    B = 8
    T = 8
    input_size = 16     # letter-feature size
    hidden_size = 32
    output_size = 16

    k_p, k_c, k_x = jax.random.split(key, 3)
    params = init_params(k_p, input_size, hidden_size, output_size)
    packed = pack_params(params, input_size, hidden_size, output_size)

    # category: one-hot over the 16 categories, fixed across the sequence
    cat_idx = jax.random.randint(k_c, (B,), 0, N_CATEGORIES)
    category = jax.nn.one_hot(cat_idx, N_CATEGORIES, dtype=jnp.float32)
    inputs = jax.random.normal(k_x, (T, B, input_size), jnp.float32)
    h0 = jnp.zeros((B, hidden_size), jnp.float32)           # init_hidden()

    # Sequence-fused path (single pallas_call)
    out_seq, hid_seq = rnn_forward_seq(category, inputs, h0, packed)
    out_seq = jax.block_until_ready(out_seq)
    hid_seq = jax.block_until_ready(hid_seq)

    out_seq_ref, hid_seq_ref = rnn_seq_ref(category, inputs, h0, params)
    assert jnp.allclose(out_seq, out_seq_ref, atol=1e-4, rtol=1e-4), \
        float(jnp.max(jnp.abs(out_seq - out_seq_ref)))
    assert jnp.allclose(hid_seq, hid_seq_ref, atol=1e-4, rtol=1e-4), \
        float(jnp.max(jnp.abs(hid_seq - hid_seq_ref)))

    # Single-step path (exact module forward signature)
    out1, hid1 = rnn_forward(category, inputs[0], h0, packed)
    out1 = jax.block_until_ready(out1)
    out1_ref, hid1_ref = rnn_forward_ref(category, inputs[0], h0, params)
    assert jnp.allclose(out1, out1_ref, atol=1e-4, rtol=1e-4)
    assert jnp.allclose(hid1, hid1_ref, atol=1e-4, rtol=1e-4)

    print("KERNEL_OK")
</pallas_src>

<mosaic_0001>
module attributes {stable_mosaic.version = 11 : i64} {
  func.func @fused_kernel(%arg0: memref<8x16xf32, #tpu.memory_space<vmem>>, %arg1: memref<64x16xf32, #tpu.memory_space<vmem>>, %arg2: memref<8x128xf32, #tpu.memory_space<vmem>>, %arg3: memref<16x128xf32, #tpu.memory_space<vmem>>, %arg4: memref<16x128xf32, #tpu.memory_space<vmem>>, %arg5: memref<1x128xf32, #tpu.memory_space<vmem>>, %arg6: memref<128x128xf32, #tpu.memory_space<vmem>>, %arg7: memref<128x128xf32, #tpu.memory_space<vmem>>, %arg8: memref<1x128xf32, #tpu.memory_space<vmem>>, %arg9: memref<64x128xf32, #tpu.memory_space<vmem>>, %arg10: memref<64x128xf32, #tpu.memory_space<vmem>>) attributes {dimension_semantics = [], scalar_prefetch = 0 : i64, scratch_operands = 0 : i64, tpu.core_type = #tpu.core_type<tc>} {
    %c0 = arith.constant 0 : index
    %c0_0 = arith.constant 0 : index
    %0 = vector.load %arg0[%c0, %c0_0] : memref<8x16xf32, #tpu.memory_space<vmem>>, vector<8x16xf32>
    %c0_1 = arith.constant 0 : index
    %c0_2 = arith.constant 0 : index
    %1 = vector.load %arg3[%c0_1, %c0_2] : memref<16x128xf32, #tpu.memory_space<vmem>>, vector<16x128xf32>
    %cst = arith.constant dense<0.000000e+00> : vector<8x128xf32>
    %2 = tpu.matmul %0, %1, %cst {dimension_numbers = #tpu.dot_dimension_numbers<[1], [0], [0], [1], [0, 0, 1, 1], [], []>} : vector<8x16xf32>, vector<16x128xf32>, vector<8x128xf32> -> vector<8x128xf32>
    %c0_3 = arith.constant 0 : index
    %c0_4 = arith.constant 0 : index
    %3 = vector.load %arg5[%c0_3, %c0_4] : memref<1x128xf32, #tpu.memory_space<vmem>>, vector<1x128xf32>
    %4 = vector.broadcast %3 : vector<1x128xf32> to vector<8x128xf32>
    %5 = arith.addf %2, %4 : vector<8x128xf32>
    %c0_5 = arith.constant 0 : index
    %c0_6 = arith.constant 0 : index
    %6 = vector.load %arg1[%c0_5, %c0_6] : memref<64x16xf32, #tpu.memory_space<vmem>>, vector<64x16xf32>
    %c0_7 = arith.constant 0 : index
    %c0_8 = arith.constant 0 : index
    %7 = vector.load %arg4[%c0_7, %c0_8] : memref<16x128xf32, #tpu.memory_space<vmem>>, vector<16x128xf32>
    %cst_9 = arith.constant dense<0.000000e+00> : vector<64x128xf32>
    %8 = tpu.matmul %6, %7, %cst_9 {dimension_numbers = #tpu.dot_dimension_numbers<[1], [0], [0], [1], [0, 0, 1, 1], [], []>} : vector<64x16xf32>, vector<16x128xf32>, vector<64x128xf32> -> vector<64x128xf32>
    %c0_10 = arith.constant 0 : index
    %c0_11 = arith.constant 0 : index
    %9 = vector.load %arg6[%c0_10, %c0_11] : memref<128x128xf32, #tpu.memory_space<vmem>>, vector<128x128xf32>
    %c0_12 = arith.constant 0 : index
    %c0_13 = arith.constant 0 : index
    %10 = vector.load %arg2[%c0_12, %c0_13] : memref<8x128xf32, #tpu.memory_space<vmem>>, vector<8x128xf32>
    %11 = vector.extract_strided_slice %8 {offsets = [0, 0], sizes = [8, 128], strides = [1, 1]} : vector<64x128xf32> to vector<8x128xf32>
    %12 = arith.addf %5, %11 : vector<8x128xf32>
    %cst_14 = arith.constant dense<0.000000e+00> : vector<8x128xf32>
    %13 = tpu.matmul %10, %9, %cst_14 {dimension_numbers = #tpu.dot_dimension_numbers<[1], [0], [0], [1], [0, 0, 1, 1], [], []>} : vector<8x128xf32>, vector<128x128xf32>, vector<8x128xf32> -> vector<8x128xf32>
    %14 = arith.addf %13, %12 : vector<8x128xf32>
    %15 = vector.extract_strided_slice %8 {offsets = [8, 0], sizes = [8, 128], strides = [1, 1]} : vector<64x128xf32> to vector<8x128xf32>
    %16 = arith.addf %5, %15 : vector<8x128xf32>
    %cst_15 = arith.constant dense<0.000000e+00> : vector<8x128xf32>
    %17 = tpu.matmul %14, %9, %cst_15 {dimension_numbers = #tpu.dot_dimension_numbers<[1], [0], [0], [1], [0, 0, 1, 1], [], []>} : vector<8x128xf32>, vector<128x128xf32>, vector<8x128xf32> -> vector<8x128xf32>
    %18 = arith.addf %17, %16 : vector<8x128xf32>
    %19 = vector.extract_strided_slice %8 {offsets = [16, 0], sizes = [8, 128], strides = [1, 1]} : vector<64x128xf32> to vector<8x128xf32>
    %20 = arith.addf %5, %19 : vector<8x128xf32>
    %cst_16 = arith.constant dense<0.000000e+00> : vector<8x128xf32>
    %21 = tpu.matmul %18, %9, %cst_16 {dimension_numbers = #tpu.dot_dimension_numbers<[1], [0], [0], [1], [0, 0, 1, 1], [], []>} : vector<8x128xf32>, vector<128x128xf32>, vector<8x128xf32> -> vector<8x128xf32>
    %22 = arith.addf %21, %20 : vector<8x128xf32>
    %23 = vector.extract_strided_slice %8 {offsets = [24, 0], sizes = [8, 128], strides = [1, 1]} : vector<64x128xf32> to vector<8x128xf32>
    %24 = arith.addf %5, %23 : vector<8x128xf32>
    %cst_17 = arith.constant dense<0.000000e+00> : vector<8x128xf32>
    %25 = tpu.matmul %22, %9, %cst_17 {dimension_numbers = #tpu.dot_dimension_numbers<[1], [0], [0], [1], [0, 0, 1, 1], [], []>} : vector<8x128xf32>, vector<128x128xf32>, vector<8x128xf32> -> vector<8x128xf32>
    %26 = arith.addf %25, %24 : vector<8x128xf32>
    %27 = vector.extract_strided_slice %8 {offsets = [32, 0], sizes = [8, 128], strides = [1, 1]} : vector<64x128xf32> to vector<8x128xf32>
    %28 = arith.addf %5, %27 : vector<8x128xf32>
    %cst_18 = arith.constant dense<0.000000e+00> : vector<8x128xf32>
    %29 = tpu.matmul %26, %9, %cst_18 {dimension_numbers = #tpu.dot_dimension_numbers<[1], [0], [0], [1], [0, 0, 1, 1], [], []>} : vector<8x128xf32>, vector<128x128xf32>, vector<8x128xf32> -> vector<8x128xf32>
    %30 = arith.addf %29, %28 : vector<8x128xf32>
    %31 = vector.extract_strided_slice %8 {offsets = [40, 0], sizes = [8, 128], strides = [1, 1]} : vector<64x128xf32> to vector<8x128xf32>
    %32 = arith.addf %5, %31 : vector<8x128xf32>
    %cst_19 = arith.constant dense<0.000000e+00> : vector<8x128xf32>
    %33 = tpu.matmul %30, %9, %cst_19 {dimension_numbers = #tpu.dot_dimension_numbers<[1], [0], [0], [1], [0, 0, 1, 1], [], []>} : vector<8x128xf32>, vector<128x128xf32>, vector<8x128xf32> -> vector<8x128xf32>
    %34 = arith.addf %33, %32 : vector<8x128xf32>
    %35 = vector.extract_strided_slice %8 {offsets = [48, 0], sizes = [8, 128], strides = [1, 1]} : vector<64x128xf32> to vector<8x128xf32>
    %36 = arith.addf %5, %35 : vector<8x128xf32>
    %cst_20 = arith.constant dense<0.000000e+00> : vector<8x128xf32>
    %37 = tpu.matmul %34, %9, %cst_20 {dimension_numbers = #tpu.dot_dimension_numbers<[1], [0], [0], [1], [0, 0, 1, 1], [], []>} : vector<8x128xf32>, vector<128x128xf32>, vector<8x128xf32> -> vector<8x128xf32>
    %38 = arith.addf %37, %36 : vector<8x128xf32>
    %39 = vector.extract_strided_slice %8 {offsets = [56, 0], sizes = [8, 128], strides = [1, 1]} : vector<64x128xf32> to vector<8x128xf32>
    %40 = arith.addf %5, %39 : vector<8x128xf32>
    %cst_21 = arith.constant dense<0.000000e+00> : vector<8x128xf32>
    %41 = tpu.matmul %38, %9, %cst_21 {dimension_numbers = #tpu.dot_dimension_numbers<[1], [0], [0], [1], [0, 0, 1, 1], [], []>} : vector<8x128xf32>, vector<128x128xf32>, vector<8x128xf32> -> vector<8x128xf32>
    %42 = arith.addf %41, %40 : vector<8x128xf32>
    %43 = tpu.concatenate %14, %18, %22, %26, %30, %34, %38, %42 in 0 : vector<8x128xf32>, vector<8x128xf32>, vector<8x128xf32>, vector<8x128xf32>, vector<8x128xf32>, vector<8x128xf32>, vector<8x128xf32>, vector<8x128xf32> -> vector<64x128xf32>
    %c0_22 = arith.constant 0 : index
    %c0_23 = arith.constant 0 : index
    %44 = vector.load %arg10[%c0_22, %c0_23] : memref<64x128xf32, #tpu.memory_space<vmem>>, vector<64x128xf32>
    tpu.vector_store %arg10[%c0_22, %c0_23], %43 {strides = array<i32>} : memref<64x128xf32, #tpu.memory_space<vmem>>, vector<64x128xf32>,
    %c0_24 = arith.constant 0 : index
    %c0_25 = arith.constant 0 : index
    %45 = vector.load %arg7[%c0_24, %c0_25] : memref<128x128xf32, #tpu.memory_space<vmem>>, vector<128x128xf32>
    %cst_26 = arith.constant dense<0.000000e+00> : vector<64x128xf32>
    %46 = tpu.matmul %43, %45, %cst_26 {dimension_numbers = #tpu.dot_dimension_numbers<[1], [0], [0], [1], [0, 0, 1, 1], [], []>} : vector<64x128xf32>, vector<128x128xf32>, vector<64x128xf32> -> vector<64x128xf32>
    %c0_27 = arith.constant 0 : index
    %c0_28 = arith.constant 0 : index
    %47 = vector.load %arg8[%c0_27, %c0_28] : memref<1x128xf32, #tpu.memory_space<vmem>>, vector<1x128xf32>
    %48 = vector.broadcast %47 : vector<1x128xf32> to vector<64x128xf32>
    %49 = arith.addf %46, %48 : vector<64x128xf32>
    %cst_29 = arith.constant dense<0xFF800000> : vector<64xf32>
    %50 = vector.multi_reduction <maximumf>, %49, %cst_29 [1] : vector<64x128xf32> to vector<64xf32>
    %51 = vector.shape_cast %50 : vector<64xf32> to vector<64x1xf32>
    %52 = vector.broadcast %51 : vector<64x1xf32> to vector<64x128xf32>
    %53 = arith.subf %49, %52 : vector<64x128xf32>
    %54 = math.exp %53 : vector<64x128xf32>
    %cst_30 = arith.constant dense<0.000000e+00> : vector<64xf32>
    %55 = vector.multi_reduction <add>, %54, %cst_30 [1] : vector<64x128xf32> to vector<64xf32>
    %56 = vector.shape_cast %55 : vector<64xf32> to vector<64x1xf32>
    %57 = math.log %56 : vector<64x1xf32>
    %58 = vector.broadcast %57 : vector<64x1xf32> to vector<64x128xf32>
    %59 = arith.subf %53, %58 : vector<64x128xf32>
    %c0_31 = arith.constant 0 : index
    %c0_32 = arith.constant 0 : index
    %60 = vector.load %arg9[%c0_31, %c0_32] : memref<64x128xf32, #tpu.memory_space<vmem>>, vector<64x128xf32>
    tpu.vector_store %arg9[%c0_31, %c0_32], %59 {strides = array<i32>} : memref<64x128xf32, #tpu.memory_space<vmem>>, vector<64x128xf32>,
    return
  }
}

</mosaic_0001>

<bundles_post_ra>
// kernel: tpu_custom_call.1
= control target key start
LH: loop header
LB: loop body
LE: loop exit
PB: predicated region body
PF: predicated region fallthrough
CT: control target
= control target key end

     0   :  { %16 = vsyncpa [#allocation3], 0  ;;  %s2445_s0 = inlined_call_operand.vmem [shape: f32[8,16], index: 0, kind: input, shape index: {}]   ;;  %s2446_s1 = inlined_call_operand.vmem [shape: f32[64,16], index: 1, kind: input, shape index: {}]   ;;  %s2447_s2 = inlined_call_operand.vmem [shape: f32[8,128], index: 2, kind: input, shape index: {}]   ;;  %s2448_s3 = inlined_call_operand.vmem [shape: f32[16,128], index: 3, kind: input, shape index: {}]   ;;  %s2449_s4 = inlined_call_operand.vmem [shape: f32[16,128], index: 4, kind: input, shape index: {}]   ;;  %s2450_s5 = inlined_call_operand.vmem [shape: f32[1,128], index: 5, kind: input, shape index: {}]   ;;  %s2451_s6 = inlined_call_operand.hbm [shape: f32[128,128], index: 6, kind: input, shape index: {}]   ;;  %s2452_s7 = inlined_call_operand.hbm [shape: f32[128,128], index: 7, kind: input, shape index: {}]   ;;  %s2453_s8 = inlined_call_operand.vmem [shape: f32[1,128], index: 8, kind: input, shape index: {}]   ;;  %s2454_s9 = inlined_call_operand.hbm [shape: f32[64,128], index: 9, kind: output, shape index: {0}]   ;;  %s2455_s10 = inlined_call_operand.hbm [shape: f32[64,128], index: 10, kind: output, shape index: {1}]  }
   0x1   :  { %17 = vsyncpa [#allocation6], 0 }
   0x2   :  { %18 = vsyncpa [#allocation4], 0 }
   0x3   :  { %19 = vsyncpa [#allocation9], 0  ;;  %s2029_s13 = smov [#allocation2]   ;;  %s1933_s17 = scalar_lea.hbm %s2451_s6, 2048 }
   0x4   :  { %s37_s14 = sshll.u32 %s2029_s13, 4  ;;  %p1934_p0 = scmp.ne.s32.totalorder %s2451_s6, %s1933_s17  ;;  %s38_s14 = int_to_ptr.vmem [resolvable:$true] %s37_s14 }
   0x5   :  { %p1937_p1 = scmp.lt.u32.totalorder %s1933_s17, %s2451_s6 }
   0x7   :  { %p1939_p2 = pnand %p1937_p1, %p1934_p0 }
   0x9   :  { %1942 = shalt.err (!%p1939_p2)
}
   0xa   :  { %s1943_s22 = scalar_lea.vmem %s38_s14, 2048  ;;  %p1948_p4 = scmp.lt.s32.totalorder %s38_s14, %s38_s14 }
   0xb   :  { %p1944_p3 = scmp.ne.s32.totalorder %s38_s14, %s1943_s22  ;;  %p1949_p5 = scmp.lt.s32.totalorder %s1943_s22, %s1943_s22 }
   0xd   :  { %p1950_p6 = por %p1949_p5, %p1948_p4 }
   0xf   :  { %p1951_p7 = pnand %p1950_p6, %p1944_p3 }
  0x11   :  { %1954 = shalt.err (!%p1951_p7)
}
  0x12   :  { %s2030_s23 = smov 128   ;;  %s2031_s24 = smov 8  }
  0x13   :  { %43 = dma.hbm_to_vmem [thread:$0]  %s2451_s6, 2048, %s38_s14, [#allocation3], %s2030_s23, %s2030_s23, %s2031_s24  }
  0x14   :  { %s2032_s27 = smov [#allocation5]   ;;  %s1955_s11 = scalar_lea.hbm %s2452_s7, 2048 }
  0x15   :  { %s49_s28 = sshll.u32 %s2032_s27, 4  ;;  %p1956_p8 = scmp.ne.s32.totalorder %s2452_s7, %s1955_s11  ;;  %s50_s28 = int_to_ptr.vmem [resolvable:$true] %s49_s28 }
  0x16   :  { %p1959_p9 = scmp.lt.u32.totalorder %s1955_s11, %s2452_s7 }
  0x18   :  { %p1961_p10 = pnand %p1959_p9, %p1956_p8 }
  0x1a   :  { %1964 = shalt.err (!%p1961_p10)
}
  0x1b   :  { %s1965_s17 = scalar_lea.vmem %s50_s28, 2048  ;;  %p1970_p12 = scmp.lt.s32.totalorder %s50_s28, %s50_s28 }
  0x1c   :  { %p1966_p11 = scmp.ne.s32.totalorder %s50_s28, %s1965_s17  ;;  %p1971_p13 = scmp.lt.s32.totalorder %s1965_s17, %s1965_s17 }
  0x1e   :  { %p1972_p0 = por %p1971_p13, %p1970_p12 }
  0x20   :  { %p1973_p1 = pnand %p1972_p0, %p1966_p11 }
  0x22   :  { %1976 = shalt.err (!%p1973_p1)
}
  0x23   :  { %55 = dma.hbm_to_vmem [thread:$0]  %s2452_s7, 2048, %s50_s28, [#allocation6], %s2030_s23, %s2030_s23, %s2031_s24  }
  0x24   :  { %2021 = dma.done.wait [#allocation3], 2048  }
  0x25   :  { %2022 = vsyncadd [#allocation3], 4294965248 }
  0x26   :  { %2023 = dma.done.wait [#allocation6], 2048  }
  0x27   :  { %2024 = vsyncadd [#allocation6], 4294965248  ;;  %v2033_v0 = vmov 0.0|0.0   ;;  %vm2034_vm0 = vmmov 0   ;;  %v2035_v1 = vmov 0.0   ;;  %v287_v2 = vld [vmem:[#allocation2] sm:$0xff] }
  0x28   :  { %1668 = vmatprep.subr.bf16.mxu1 %v2033_v0  ;;  %1661 = vmatprep.subr.bf16.mxu0 %v2033_v0  ;;  %v288_v3 = vld [vmem:[#allocation2 + $0x8] sm:$0xff]  ;;  %v289_v4 = vld [vmem:[#allocation2 + $0x10] sm:$0xff]  ;;  %v290_v6 = vld [vmem:[#allocation2 + $0x18] sm:$0xff]  ;;  %vm74_vm1 = vcmask 130048  }
  0x29   :  { %1318 = vmatprep.mubr.msk.f32.mxu0 %vm2034_vm0, %v2035_v1  ;;  %1369 = vmatprep.mubr.msk.f32.mxu1 %vm2034_vm0, %v2035_v1  ;;  %v2129_v5 = vpack.c.bf16 %v288_v3, %v287_v2  ;;  %v65_v7 = vld [vmem:[%s2448_s3] sm:$0xff]  ;;  %v66_v8 = vld [vmem:[%s2448_s3 + $0x8] sm:$0xff]  ;;  %v2138_v10 = vpack.c.bf16 %v290_v6, %v289_v4  ;;  %v293_v19 = vld [vmem:[#allocation2 + $0x30] sm:$0xff] }
  0x2a   :  { %v1662_v9 = vpack.c.bf16 %v66_v8, %v65_v7  ;;  %v156_v11 = vld [vmem:[%s2449_s4] sm:$0xff]  ;;  %v157_v12 = vld [vmem:[%s2449_s4 + $0x8] sm:$0xff]  ;;  %v294_v20 = vld [vmem:[#allocation2 + $0x38] sm:$0xff] }
  0x2b   :  { %1670 = vmatpush3.bf16.msra.mxu1 %v2129_v5  ;;  %v291_v13 = vld [vmem:[#allocation2 + $0x20] sm:$0xff]  ;;  %v292_v14 = vld [vmem:[#allocation2 + $0x28] sm:$0xff]  ;;  %v1664_v16 = vpack.c.bf16 %v157_v12, %v156_v11  ;;  %v150_v22 = vld [vmem:[%s2446_s1 + $0x10] sm:$0xff]  ;;  %v2167_v23 = vpack.c.bf16 %v294_v20, %v293_v19 }
  0x2c   :  { %1671 = vmatprep.subr.bf16.mxu1 %v2033_v0  ;;  %1663 = vmatpush3.bf16.msra.mxu0 %v1662_v9  ;;  %v64_v15 = vld [vmem:[%s2445_s0] sm:$0xff]  ;;  %v2154_v18 = vpack.c.bf16 %v292_v14, %v291_v13  ;;  %v149_v21 = vld [vmem:[%s2446_s1 + $0x8] sm:$0xff]  ;;  %v151_v26 = vld [vmem:[%s2446_s1 + $0x18] sm:$0xff] }
  0x2d   :  { %1665 = vmatprep.subr.bf16.mxu0 %v1664_v16  ;;  %v148_v17 = vld [vmem:[%s2446_s1] sm:$0xff]  ;;  %v296_v25 = vld [vmem:[#allocation2 + $0x48] sm:$0xff]  ;;  %v297_v29 = vld [vmem:[#allocation2 + $0x50] sm:$0xff] }
  0x2e   :  { %v295_v24 = vld [vmem:[#allocation2 + $0x40] sm:$0xff]  ;;  %v298_v30 = vld [vmem:[#allocation2 + $0x58] sm:$0xff]  ;;  %v153_v31 = vld [vmem:[%s2446_s1 + $0x28] sm:$0xff] }
  0x2f   :  { %1673 = vmatpush3.bf16.msra.mxu1 %v2138_v10  ;;  %1319 = vmatmul.mubr.msk.f32.vlgmr.msra.gmra.mrb[0].mxu0 %vm74_vm1, %v64_v15  ;;  %v152_v27 = vld [vmem:[%s2446_s1 + $0x20] sm:$0xff]  ;;  %v2181_v28 = vpack.c.bf16 %v296_v25, %v295_v24  ;;  %v154_v32 = vld [vmem:[%s2446_s1 + $0x30] sm:$0xff]  ;;  %v2195_v33 = vpack.c.bf16 %v298_v30, %v297_v29  ;;  %v300_v35 = vld [vmem:[#allocation2 + $0x68] sm:$0xff] }
  0x30   :  { %1674 = vmatprep.subr.bf16.mxu1 %v2033_v0  ;;  %1667 = vmatpush3.bf16.msra.mxu0 %v1664_v16  ;;  %v299_v34 = vld [vmem:[#allocation2 + $0x60] sm:$0xff]  ;;  %v155_v36 = vld [vmem:[%s2446_s1 + $0x38] sm:$0xff]  ;;  %v301_v38 = vld [vmem:[#allocation2 + $0x70] sm:$0xff] }
  0x31   :  { %1325 = vmatprep.mubr.msk.f32.mxu0 %vm74_vm1, %v148_v17  ;;  %1716 = vmatprep.subr.bf16.mxu0 %v2033_v0  ;;  %v2206_v37 = vpack.c.bf16 %v300_v35, %v299_v34  ;;  %v302_v39 = vld [vmem:[#allocation2 + $0x78] sm:$0xff]  ;;  %v303_v41 = vld [vmem:[%s2447_s2] sm:$0xff]  ;;  %v882_v17 = vld [vmem:[#allocation5 + $0x10] sm:$0xff] }
  0x32   :  { %v2215_v40 = vpack.c.bf16 %v302_v39, %v301_v38  ;;  %v1130_v42 = vld [vmem:[%s2450_s5] ss:$0 sm:$0xff]  ;;  %v885_v24 = vld [vmem:[#allocation5 + $0x28] sm:$0xff]  ;;  %v886_v25 = vld [vmem:[#allocation5 + $0x30] sm:$0xff] }
  0x33   :  { %1676 = vmatpush3.bf16.msra.mxu1 %v2154_v18  ;;  %1326 = vmatmul.mubr.msk.f32.vlgmr.msra.gmra.mrb[2].mxu0 %vm74_vm1, %v149_v21  ;;  %v889_v29 = vld [vmem:[#allocation5 + $0x48] sm:$0xff]  ;;  %v892_v34 = vld [vmem:[#allocation5 + $0x60] sm:$0xff]  ;;  %v895_v38 = vld [vmem:[#allocation5 + $0x78] sm:$0xff] }
  0x34   :  { %1677 = vmatprep.subr.bf16.mxu1 %v2033_v0  ;;  %1328 = vmatprep.mubr.msk.f32.mxu0 %vm74_vm1, %v150_v22  ;;  %v893_v35 = vld [vmem:[#allocation5 + $0x68] sm:$0xff] }
  0x35   :  { %1718 = vmatpush3.bf16.msra.mxu0 %v2129_v5 }
  0x36   :  { %1719 = vmatprep.subr.bf16.mxu0 %v2033_v0 }
  0x37   :  { %1679 = vmatpush3.bf16.msra.mxu1 %v2167_v23  ;;  %1329 = vmatmul.mubr.msk.f32.gmra.mrb[4].mxu0 %vm74_vm1, %v151_v26  ;;  %v887_v26 = vld [vmem:[#allocation5 + $0x38] sm:$0xff] }
  0x38   :  { %1680 = vmatprep.subr.bf16.mxu1 %v2033_v0  ;;  %1331 = vmatprep.mubr.msk.f32.mxu0 %vm74_vm1, %v152_v27  ;;  %v1872_v27 = vpack.c.bf16 %v887_v26, %v886_v25 }
  0x39   :  { %1721 = vmatpush3.bf16.msra.mxu0 %v2138_v10 }
  0x3a   :  { %1722 = vmatprep.subr.bf16.mxu0 %v2033_v0 }
  0x3b   :  { %1682 = vmatpush3.bf16.msra.mxu1 %v2181_v28  ;;  %1332 = vmatmul.mubr.msk.f32.gmra.mrb[6].mxu0 %vm74_vm1, %v153_v31  ;;  %v890_v31 = vld [vmem:[#allocation5 + $0x50] sm:$0xff] }
  0x3c   :  { %1683 = vmatprep.subr.bf16.mxu1 %v2033_v0  ;;  %1334 = vmatprep.mubr.msk.f32.mxu0 %vm74_vm1, %v154_v32  ;;  %v891_v32 = vld [vmem:[#allocation5 + $0x58] sm:$0xff] }
  0x3d   :  { %1724 = vmatpush3.bf16.msra.mxu0 %v2154_v18 }
  0x3e   :  { %1725 = vmatprep.subr.bf16.mxu0 %v2033_v0 }
  0x3f   :  { %1685 = vmatpush3.bf16.msra.mxu1 %v2195_v33  ;;  %1335 = vmatmul.mubr.msk.f32.gmra.mrb[8].mxu0 %vm74_vm1, %v155_v36  ;;  %v1884_v36 = vpack.c.bf16 %v893_v35, %v892_v34 }
  0x40   :  { %1686 = vmatprep.subr.bf16.mxu1 %v2033_v0  ;;  %1439 = vmatprep.mubr.msk.f32.mxu0 %vm2034_vm0, %v2035_v1 }
  0x41   :  { %1727 = vmatpush3.bf16.msra.mxu0 %v2167_v23 }
  0x42   :  { %1728 = vmatprep.subr.bf16.mxu0 %v2033_v0 }
  0x43   :  { %1688 = vmatpush3.bf16.msra.mxu1 %v2206_v37 }
  0x44   :  { %1689 = vmatprep.subr.bf16.mxu1 %v2033_v0 }
  0x45   :  { %1730 = vmatpush3.bf16.msra.mxu0 %v2181_v28 }
  0x46   :  { %1731 = vmatprep.subr.bf16.mxu0 %v2033_v0 }
  0x47   :  { %1691 = vmatpush3.bf16.msra.mxu1 %v2215_v40 }
  0x48   :  { %1692 = vmatprep.subr.bf16.mxu1 %v2033_v0 }
  0x49   :  { %1733 = vmatpush3.bf16.msra.mxu0 %v2195_v33 }
  0x4a   :  { %1370 = vmatmul.mubr.f32.vlgmr.msra.gmra.mrb[0].mxu1 %v303_v41  ;;  %1734 = vmatprep.subr.bf16.mxu0 %v2033_v0 }
  0x4b   :  { %1694 = vmatpush3.bf16.msra.mxu1 %v2129_v5  ;;  %1404 = vmatprep.mubr.msk.f32.mxu1 %vm2034_vm0, %v2035_v1 }
  0x4c   :  { %1695 = vmatprep.subr.bf16.mxu1 %v2033_v0 }
  0x4d   :  { %1736 = vmatpush3.bf16.msra.mxu0 %v2206_v37 }
  0x4e   :  { %1737 = vmatprep.subr.bf16.mxu0 %v2033_v0 }
  0x4f   :  { %1697 = vmatpush3.bf16.msra.mxu1 %v2138_v10 }
  0x50   :  { %1698 = vmatprep.subr.bf16.mxu1 %v2033_v0 }
  0x51   :  { %1739 = vmatpush3.bf16.msra.mxu0 %v2215_v40 }
  0x52   :  { %1764 = vmatprep.subr.bf16.mxu0 %v2033_v0 }
  0x53   :  { %1700 = vmatpush3.bf16.msra.mxu1 %v2154_v18 }
  0x54   :  { %1701 = vmatprep.subr.bf16.mxu1 %v2033_v0 }
  0x57   :  { %1703 = vmatpush3.bf16.msra.mxu1 %v2167_v23 }
  0x58   :  { %1704 = vmatprep.subr.bf16.mxu1 %v2033_v0 }
  0x5b   :  { %1706 = vmatpush3.bf16.msra.mxu1 %v2181_v28 }
  0x5c   :  { %1707 = vmatprep.subr.bf16.mxu1 %v2033_v0 }
  0x5f   :  { %1709 = vmatpush3.bf16.msra.mxu1 %v2195_v33 }
  0x60   :  { %1710 = vmatprep.subr.bf16.mxu1 %v2033_v0 }
  0x63   :  { %1712 = vmatpush3.bf16.msra.mxu1 %v2206_v37 }
  0x64   :  { %1713 = vmatprep.subr.bf16.mxu1 %v2033_v0 }
  0x67   :  { %1715 = vmatpush3.bf16.msra.mxu1 %v2215_v40 }
  0x68   :  { %1740 = vmatprep.subr.bf16.mxu1 %v2033_v0 }
 0x102   :  { %v144_v43 = vpop.f32.mrb[0].mxu0 }
 0x103   :  { %v145_v44 = vadd.f32 %v1130_v42, %v144_v43  ;;  %v1320_v45 = vpop.f32.mrb[1].mxu0  ;;  %v1140_v43 = vld [vmem:[%s2453_s8] ss:$0 sm:$0xff]  ;;  %s2036_s8 = smov [#allocation8]  }
 0x104   :  { %s1113_s25 = sshll.u32 %s2036_s8, 4  ;;  %s1114_s25 = int_to_ptr.vmem [resolvable:$true] %s1113_s25 }
 0x105   :  { %s1977_s26 = scalar_lea.vmem %s1114_s25, 1024  ;;  %p1982_p3 = scmp.lt.s32.totalorder %s1114_s25, %s1114_s25 }
 0x106   :  { %v1327_v46 = vpop.f32.mrb[2].mxu0  ;;  %p1978_p2 = scmp.ne.s32.totalorder %s1114_s25, %s1977_s26  ;;  %p1983_p4 = scmp.lt.s32.totalorder %s1977_s26, %s1977_s26 }
 0x107   :  { %v375_v47 = vadd.f32 %v1327_v46, %v145_v44  ;;  %v248_v48 = vpop.f32.mrb[3].mxu0 }
 0x108   :  { %v304_v49 = vadd.f32 %v248_v48, %v145_v44  ;;  %p1984_p5 = por %p1983_p4, %p1982_p3 }
 0x10a   :  { %v1330_v50 = vpop.f32.mrb[4].mxu0  ;;  %p1985_p6 = pnand %p1984_p5, %p1978_p2 }
 0x10b   :  { %v2252_v51 = vadd.f32 %v1330_v50, %v145_v44  ;;  %v258_v52 = vpop.f32.mrb[5].mxu0 }
 0x10c   :  { %v446_v53 = vadd.f32 %v258_v52, %v145_v44 }
 0x10e   :  { %v1333_v54 = vpop.f32.mrb[6].mxu0 }
 0x10f   :  { %v2254_v55 = vadd.f32 %v1333_v54, %v145_v44  ;;  %v268_v56 = vpop.f32.mrb[7].mxu0 }
 0x110   :  { %v2256_v57 = vadd.f32 %v268_v56, %v145_v44 }
 0x112   :  { %v1336_v58 = vpop.f32.mrb[8].mxu0 }
 0x113   :  { %v2258_v59 = vadd.f32 %v1336_v58, %v145_v44  ;;  %v278_v60 = vpop.f32.mrb[9].mxu0 }
 0x114   :  { %v2260_v61 = vadd.f32 %v278_v60, %v145_v44 }
 0x11d   :  { %v371_v62 = vpop.f32.mrb[0].mxu1 }
 0x11e   :  { %v2262_v63 = vadd.f32 %v371_v62, %v304_v49  ;;  %v1371_v2 = vpop.f32.mrb[1].mxu1 }
 0x120   :  { %872 = vst [vmem:[#allocation8] sm:$0xff] %v2262_v63  ;;  %1405 = vmatmul.mubr.f32.vlgmr.msra.gmra.mrb[2].mxu1 %v2262_v63 }
 0x121   :  { %1742 = vmatpush3.bf16.msra.mxu1 %v2129_v5  ;;  %1474 = vmatprep.mubr.msk.f32.mxu1 %vm2034_vm0, %v2035_v1 }
 0x122   :  { %1743 = vmatprep.subr.bf16.mxu1 %v2033_v0 }
 0x125   :  { %1745 = vmatpush3.bf16.msra.mxu1 %v2138_v10 }
 0x126   :  { %1746 = vmatprep.subr.bf16.mxu1 %v2033_v0 }
 0x129   :  { %1748 = vmatpush3.bf16.msra.mxu1 %v2154_v18 }
 0x12a   :  { %1749 = vmatprep.subr.bf16.mxu1 %v2033_v0 }
 0x12d   :  { %1751 = vmatpush3.bf16.msra.mxu1 %v2167_v23 }
 0x12e   :  { %1752 = vmatprep.subr.bf16.mxu1 %v2033_v0 }
 0x131   :  { %1754 = vmatpush3.bf16.msra.mxu1 %v2181_v28 }
 0x132   :  { %1755 = vmatprep.subr.bf16.mxu1 %v2033_v0 }
 0x135   :  { %1757 = vmatpush3.bf16.msra.mxu1 %v2195_v33 }
 0x136   :  { %1758 = vmatprep.subr.bf16.mxu1 %v2033_v0 }
 0x139   :  { %1760 = vmatpush3.bf16.msra.mxu1 %v2206_v37 }
 0x13a   :  { %1761 = vmatprep.subr.bf16.mxu1 %v2033_v0 }
 0x13d   :  { %1763 = vmatpush3.bf16.msra.mxu1 %v2215_v40 }
 0x13e   :  { %1788 = vmatprep.subr.bf16.mxu1 %v2033_v0 }
 0x1f3   :  { %v442_v3 = vpop.f32.mrb[2].mxu1 }
 0x1f4   :  { %v2284_v4 = vadd.f32 %v442_v3, %v375_v47  ;;  %v1406_v6 = vpop.f32.mrb[3].mxu1 }
 0x1f6   :  { %873 = vst [vmem:[#allocation8 + $0x8] sm:$0xff] %v2284_v4  ;;  %1440 = vmatmul.mubr.f32.vlgmr.msra.gmra.mrb[10].mxu0 %v2284_v4 }
 0x1f7   :  { %1766 = vmatpush3.bf16.msra.mxu0 %v2129_v5  ;;  %1509 = vmatprep.mubr.msk.f32.mxu0 %vm2034_vm0, %v2035_v1 }
 0x1f8   :  { %1767 = vmatprep.subr.bf16.mxu0 %v2033_v0 }
 0x1fb   :  { %1769 = vmatpush3.bf16.msra.mxu0 %v2138_v10 }
 0x1fc   :  { %1770 = vmatprep.subr.bf16.mxu0 %v2033_v0 }
 0x1ff   :  { %1772 = vmatpush3.bf16.msra.mxu0 %v2154_v18 }
 0x200   :  { %1773 = vmatprep.subr.bf16.mxu0 %v2033_v0 }
 0x203   :  { %1775 = vmatpush3.bf16.msra.mxu0 %v2167_v23 }
 0x204   :  { %1776 = vmatprep.subr.bf16.mxu0 %v2033_v0 }
 0x207   :  { %1778 = vmatpush3.bf16.msra.mxu0 %v2181_v28 }
 0x208   :  { %1779 = vmatprep.subr.bf16.mxu0 %v2033_v0 }
 0x20b   :  { %1781 = vmatpush3.bf16.msra.mxu0 %v2195_v33 }
 0x20c   :  { %1782 = vmatprep.subr.bf16.mxu0 %v2033_v0 }
 0x20f   :  { %1784 = vmatpush3.bf16.msra.mxu0 %v2206_v37 }
 0x210   :  { %1785 = vmatprep.subr.bf16.mxu0 %v2033_v0 }
 0x213   :  { %1787 = vmatpush3.bf16.msra.mxu0 %v2215_v40 }
 0x214   :  { %1812 = vmatprep.subr.bf16.mxu0 %v2033_v0 }
 0x2c9   :  { %v513_v7 = vpop.f32.mrb[10].mxu0 }
 0x2ca   :  { %v2306_v8 = vadd.f32 %v513_v7, %v446_v53  ;;  %v1441_v9 = vpop.f32.mrb[11].mxu0 }
 0x2cc   :  { %874 = vst [vmem:[#allocation8 + $0x10] sm:$0xff] %v2306_v8  ;;  %1475 = vmatmul.mubr.f32.vlgmr.msra.gmra.mrb[4].mxu1 %v2306_v8 }
 0x2cd   :  { %1790 = vmatpush3.bf16.msra.mxu1 %v2129_v5  ;;  %1544 = vmatprep.mubr.msk.f32.mxu1 %vm2034_vm0, %v2035_v1 }
 0x2ce   :  { %1791 = vmatprep.subr.bf16.mxu1 %v2033_v0 }
 0x2d1   :  { %1793 = vmatpush3.bf16.msra.mxu1 %v2138_v10 }
 0x2d2   :  { %1794 = vmatprep.subr.bf16.mxu1 %v2033_v0 }
 0x2d5   :  { %1796 = vmatpush3.bf16.msra.mxu1 %v2154_v18 }
 0x2d6   :  { %1797 = vmatprep.subr.bf16.mxu1 %v2033_v0 }
 0x2d9   :  { %1799 = vmatpush3.bf16.msra.mxu1 %v2167_v23 }
 0x2da   :  { %1800 = vmatprep.subr.bf16.mxu1 %v2033_v0 }
 0x2dd   :  { %1802 = vmatpush3.bf16.msra.mxu1 %v2181_v28 }
 0x2de   :  { %1803 = vmatprep.subr.bf16.mxu1 %v2033_v0 }
 0x2e1   :  { %1805 = vmatpush3.bf16.msra.mxu1 %v2195_v33 }
 0x2e2   :  { %1806 = vmatprep.subr.bf16.mxu1 %v2033_v0 }
 0x2e5   :  { %1808 = vmatpush3.bf16.msra.mxu1 %v2206_v37 }
 0x2e6   :  { %1809 = vmatprep.subr.bf16.mxu1 %v2033_v0 }
 0x2e9   :  { %1811 = vmatpush3.bf16.msra.mxu1 %v2215_v40 }
 0x2ea   :  { %1836 = vmatprep.subr.bf16.mxu1 %v2033_v0 }
 0x39f   :  { %v584_v11 = vpop.f32.mrb[4].mxu1 }
 0x3a0   :  { %v2329_v12 = vadd.f32 %v584_v11, %v2252_v51  ;;  %v1476_v13 = vpop.f32.mrb[5].mxu1 }
 0x3a2   :  { %875 = vst [vmem:[#allocation8 + $0x18] sm:$0xff] %v2329_v12  ;;  %1510 = vmatmul.mubr.f32.vlgmr.msra.gmra.mrb[12].mxu0 %v2329_v12 }
 0x3a3   :  { %1814 = vmatpush3.bf16.msra.mxu0 %v2129_v5  ;;  %1579 = vmatprep.mubr.msk.f32.mxu0 %vm2034_vm0, %v2035_v1 }
 0x3a4   :  { %1815 = vmatprep.subr.bf16.mxu0 %v2033_v0 }
 0x3a7   :  { %1817 = vmatpush3.bf16.msra.mxu0 %v2138_v10 }
 0x3a8   :  { %1818 = vmatprep.subr.bf16.mxu0 %v2033_v0 }
 0x3ab   :  { %1820 = vmatpush3.bf16.msra.mxu0 %v2154_v18 }
 0x3ac   :  { %1821 = vmatprep.subr.bf16.mxu0 %v2033_v0 }
 0x3af   :  { %1823 = vmatpush3.bf16.msra.mxu0 %v2167_v23 }
 0x3b0   :  { %1824 = vmatprep.subr.bf16.mxu0 %v2033_v0 }
 0x3b3   :  { %1826 = vmatpush3.bf16.msra.mxu0 %v2181_v28 }
 0x3b4   :  { %1827 = vmatprep.subr.bf16.mxu0 %v2033_v0 }
 0x3b7   :  { %1829 = vmatpush3.bf16.msra.mxu0 %v2195_v33 }
 0x3b8   :  { %1830 = vmatprep.subr.bf16.mxu0 %v2033_v0 }
 0x3bb   :  { %1832 = vmatpush3.bf16.msra.mxu0 %v2206_v37 }
 0x3bc   :  { %1833 = vmatprep.subr.bf16.mxu0 %v2033_v0 }
 0x3bf   :  { %1835 = vmatpush3.bf16.msra.mxu0 %v2215_v40 }
 0x475   :  { %v655_v14 = vpop.f32.mrb[12].mxu0 }
 0x476   :  { %v2351_v15 = vadd.f32 %v655_v14, %v2256_v57  ;;  %v1511_v16 = vpop.f32.mrb[13].mxu0 }
 0x478   :  { %876 = vst [vmem:[#allocation8 + $0x20] sm:$0xff] %v2351_v15  ;;  %1545 = vmatmul.mubr.f32.vlgmr.msra.gmra.mrb[6].mxu1 %v2351_v15 }
 0x479   :  { %1838 = vmatpush3.bf16.msra.mxu1 %v2129_v5  ;;  %1614 = vmatprep.mubr.msk.f32.mxu1 %vm2034_vm0, %v2035_v1  ;;  %v880_v1 = vld [vmem:[#allocation5] sm:$0xff]  ;;  %v881_v5 = vld [vmem:[#allocation5 + $0x8] sm:$0xff] }
 0x47a   :  { %1839 = vmatprep.subr.bf16.mxu1 %v2033_v0 }
 0x47d   :  { %1841 = vmatpush3.bf16.msra.mxu1 %v2138_v10  ;;  %v1860_v10 = vpack.c.bf16 %v881_v5, %v880_v1 }
 0x47e   :  { %1842 = vmatprep.subr.bf16.mxu1 %v2033_v0 }
 0x47f   :  { %1861 = vmatprep.subr.bf16.mxu0 %v1860_v10 }
 0x481   :  { %1844 = vmatpush3.bf16.msra.mxu1 %v2154_v18  ;;  %v883_v18 = vld [vmem:[#allocation5 + $0x18] sm:$0xff] }
 0x482   :  { %1845 = vmatprep.subr.bf16.mxu1 %v2033_v0  ;;  %v1864_v22 = vpack.c.bf16 %v883_v18, %v882_v17 }
 0x485   :  { %1847 = vmatpush3.bf16.msra.mxu1 %v2167_v23  ;;  %v884_v23 = vld [vmem:[#allocation5 + $0x20] sm:$0xff] }
 0x486   :  { %1848 = vmatprep.subr.bf16.mxu1 %v2033_v0 }
 0x489   :  { %1850 = vmatpush3.bf16.msra.mxu1 %v2181_v28  ;;  %v888_v28 = vld [vmem:[#allocation5 + $0x40] sm:$0xff] }
 0x48a   :  { %1851 = vmatprep.subr.bf16.mxu1 %v2033_v0  ;;  %v1876_v30 = vpack.c.bf16 %v889_v29, %v888_v28 }
 0x48d   :  { %1853 = vmatpush3.bf16.msra.mxu1 %v2195_v33  ;;  %v1880_v33 = vpack.c.bf16 %v891_v32, %v890_v31 }
 0x48e   :  { %1854 = vmatprep.subr.bf16.mxu1 %v2033_v0 }
 0x491   :  { %1856 = vmatpush3.bf16.msra.mxu1 %v2206_v37  ;;  %v894_v37 = vld [vmem:[#allocation5 + $0x70] sm:$0xff] }
 0x492   :  { %1857 = vmatprep.subr.bf16.mxu1 %v2033_v0  ;;  %v1868_v0 = vpack.c.bf16 %v885_v24, %v884_v23  ;;  %v1888_v39 = vpack.c.bf16 %v895_v38, %v894_v37 }
 0x495   :  { %1859 = vmatpush3.bf16.msra.mxu1 %v2215_v40 }
 0x54b   :  { %v726_v19 = vpop.f32.mrb[6].mxu1 }
 0x54c   :  { %v727_v20 = vadd.f32 %v726_v19, %v2254_v55  ;;  %v1546_v21 = vpop.f32.mrb[7].mxu1 }
 0x54e   :  { %877 = vst [vmem:[#allocation8 + $0x28] sm:$0xff] %v727_v20  ;;  %1580 = vmatmul.mubr.f32.vlgmr.msra.gmra.mrb[14].mxu0 %v727_v20 }
 0x54f   :  { %1863 = vmatpush3.bf16.msra.mxu0 %v1860_v10  ;;  %1649 = vmatprep.mubr.f32.mxu0 %v2262_v63 }
 0x550   :  { %1865 = vmatprep.subr.bf16.mxu0 %v1864_v22 }
 0x553   :  { %1867 = vmatpush3.bf16.msra.mxu0 %v1864_v22 }
 0x554   :  { %1869 = vmatprep.subr.bf16.mxu0 %v1868_v0 }
 0x557   :  { %1871 = vmatpush3.bf16.msra.mxu0 %v1868_v0 }
 0x558   :  { %1873 = vmatprep.subr.bf16.mxu0 %v1872_v27 }
 0x55b   :  { %1875 = vmatpush3.bf16.msra.mxu0 %v1872_v27 }
 0x55c   :  { %1877 = vmatprep.subr.bf16.mxu0 %v1876_v30 }
 0x55f   :  { %1879 = vmatpush3.bf16.msra.mxu0 %v1876_v30 }
 0x560   :  { %1881 = vmatprep.subr.bf16.mxu0 %v1880_v33 }
 0x563   :  { %1883 = vmatpush3.bf16.msra.mxu0 %v1880_v33 }
 0x564   :  { %1885 = vmatprep.subr.bf16.mxu0 %v1884_v36 }
 0x567   :  { %1887 = vmatpush3.bf16.msra.mxu0 %v1884_v36 }
 0x568   :  { %1889 = vmatprep.subr.bf16.mxu0 %v1888_v39 }
 0x56b   :  { %1891 = vmatpush3.bf16.msra.mxu0 %v1888_v39 }
 0x56e   :  { %1650 = vmatmul.mubr.f32.vlgmr.msra.gmra.mrb[16].mxu0 %v2284_v4 }
 0x56f   :  { %1652 = vmatprep.mubr.f32.mxu0 %v2306_v8 }
 0x572   :  { %1653 = vmatmul.mubr.f32.gmra.mrb[18].mxu0 %v2329_v12 }
 0x573   :  { %1655 = vmatprep.mubr.f32.mxu0 %v2351_v15 }
 0x576   :  { %1656 = vmatmul.mubr.f32.gmra.mrb[20].mxu0 %v727_v20 }
 0x621   :  { %v797_v40 = vpop.f32.mrb[14].mxu0 }
 0x622   :  { %v798_v41 = vadd.f32 %v797_v40, %v2260_v61  ;;  %v1581_v42 = vpop.f32.mrb[15].mxu0 }
 0x624   :  { %878 = vst [vmem:[#allocation8 + $0x30] sm:$0xff] %v798_v41  ;;  %1615 = vmatmul.mubr.f32.vlgmr.msra.gmra.mrb[8].mxu1 %v798_v41  ;;  %1658 = vmatprep.mubr.f32.mxu0 %v798_v41 }
 0x641   :  { %v1651_v44 = vpop.f32.mrb[16].mxu0 }
 0x642   :  { %v975_v45 = vadd.f32 %v1651_v44, %v1140_v43  ;;  %v969_v46 = vpop.f32.mrb[17].mxu0 }
 0x643   :  { %v970_v48 = vadd.f32 %v1140_v43, %v969_v46 }
 0x644   :  { %1010 = vmax.xlane.f32.xlu0 %v975_v45 }
 0x645   :  { %v1654_v47 = vpop.f32.mrb[18].mxu0 }
 0x646   :  { %v985_v49 = vadd.f32 %v1654_v47, %v1140_v43  ;;  %v979_v50 = vpop.f32.mrb[19].mxu0 }
 0x647   :  { %v980_v52 = vadd.f32 %v1140_v43, %v979_v50 }
 0x648   :  { %1014 = vmax.xlane.f32.xlu1 %v985_v49  ;;  %1008 = vmax.xlane.f32.xlu0 %v970_v48 }
 0x649   :  { %v1657_v51 = vpop.f32.mrb[20].mxu0 }
 0x64a   :  { %v989_v53 = vpop.f32.mrb[21].mxu0  ;;  %v995_v55 = vadd.f32 %v1657_v51, %v1140_v43 }
 0x64b   :  { %v990_v54 = vadd.f32 %v1140_v43, %v989_v53 }
 0x64c   :  { %1012 = vmax.xlane.f32.xlu1 %v980_v52 }
 0x64d   :  { %1016 = vmax.xlane.f32.xlu0 %v990_v54 }
 0x650   :  { %1018 = vmax.xlane.f32.xlu1 %v995_v55 }
 0x6d1   :  { %v1011_v60 = vpop.xlane.xlu0 %1010 }
 0x6d2   :  { %v2383_v2 = vsub.f32 %v975_v45, %v1011_v60 }
 0x6d4   :  { %v1034_v4 = vmul.f32 1.442695, %v2383_v2 }
 0x6d5   :  { %v1015_v61 = vpop.xlane.xlu1 %1014  ;;  %v1009_v62 = vpop.xlane.xlu0 %1008 }
 0x6d6   :  { %v2385_v3 = vsub.f32 %v970_v48, %v1009_v62  ;;  %v2388_v6 = vsub.f32 %v985_v49, %v1015_v61  ;;  %1901 = vpow2.f32 %v1034_v4 }
 0x6d8   :  { %v1032_v7 = vmul.f32 1.442695, %v2385_v3  ;;  %v1038_v11 = vmul.f32 1.442695, %v2388_v6 }
 0x6d9   :  { %v1013_v63 = vpop.xlane.xlu1 %1012 }
 0x6da   :  { %v2391_v8 = vsub.f32 %v980_v52, %v1013_v63  ;;  %v1017_v9 = vpop.xlane.xlu0 %1016  ;;  %1903 = vpow2.f32 %v1032_v7 }
 0x6db   :  { %v2397_v14 = vsub.f32 %v990_v54, %v1017_v9  ;;  %1905 = vpow2.f32 %v1038_v11 }
 0x6dc   :  { %v1036_v13 = vmul.f32 1.442695, %v2391_v8 }
 0x6dd   :  { %v1040_v1 = vmul.f32 1.442695, %v2397_v14 }
 0x6de   :  { %1907 = vpow2.f32 %v1036_v13 }
 0x6e0   :  { %v1902_v18 = vpop.eup %1901 }
 0x6e4   :  { %v1904_v19 = vpop.eup %1903 }
 0x6e5   :  { %v1906_v20 = vpop.eup %1905 }
 0x6e8   :  { %v1908_v21 = vpop.eup %1907 }
 0x6f7   :  { %v868_v56 = vpop.f32.mrb[8].mxu1 }
 0x6f8   :  { %v869_v57 = vadd.f32 %v868_v56, %v2258_v59  ;;  %v1616_v58 = vpop.f32.mrb[9].mxu1  ;;  %v1019_v59 = vpop.xlane.xlu1 %1018 }
 0x6f9   :  { %v2394_v12 = vsub.f32 %v995_v55, %v1019_v59 }
 0x6fa   :  { %879 = vst [vmem:[#allocation8 + $0x38] sm:$0xff] %v869_v57  ;;  %1659 = vmatmul.mubr.f32.gmra.mrb[22].mxu0 %v869_v57 }
 0x6fb   :  { %v1042_v15 = vmul.f32 1.442695, %v2394_v12 }
 0x6fd   :  { %1909 = vpow2.f32 %v1042_v15 }
 0x6fe   :  { %1911 = vpow2.f32 %v1040_v1 }
 0x707   :  { %v1910_v22 = vpop.eup %1909 }
 0x708   :  { %v1912_v23 = vpop.eup %1911 }
 0x7cd   :  { %v1660_v16 = vpop.f32.mrb[22].mxu0 }
 0x7ce   :  { %v1005_v5 = vadd.f32 %v1660_v16, %v1140_v43  ;;  %v999_v10 = vpop.f32.mrb[23].mxu0 }
 0x7cf   :  { %v1000_v17 = vadd.f32 %v1140_v43, %v999_v10 }
 0x7d0   :  { %1022 = vmax.xlane.f32.xlu1 %v1005_v5 }
 0x7d1   :  { %1020 = vmax.xlane.f32.xlu0 %v1000_v17 }
 0x7d4   :  { %1050 = vadd.xlane.f32.xlu1 %v1902_v18 }
 0x7d5   :  { %1048 = vadd.xlane.f32.xlu0 %v1904_v19 }
 0x7d8   :  { %1054 = vadd.xlane.f32.xlu1 %v1906_v20 }
 0x7d9   :  { %1052 = vadd.xlane.f32.xlu0 %v1908_v21 }
 0x7dc   :  { %1058 = vadd.xlane.f32.xlu1 %v1910_v22 }
 0x7dd   :  { %1056 = vadd.xlane.f32.xlu0 %v1912_v23 }
 0x85d   :  { %v1023_v24 = vpop.xlane.xlu1 %1022 }
 0x85e   :  { %v2401_v0 = vsub.f32 %v1005_v5, %v1023_v24  ;;  %v1021_v25 = vpop.xlane.xlu0 %1020 }
 0x85f   :  { %v2403_v26 = vsub.f32 %v1000_v17, %v1021_v25 }
 0x860   :  { %v1046_v27 = vmul.f32 1.442695, %v2401_v0 }
 0x861   :  { %v1044_v28 = vmul.f32 1.442695, %v2403_v26  ;;  %v1051_v29 = vpop.xlane.xlu1 %1050 }
 0x862   :  { %1913 = vpow2.f32 %v1046_v27  ;;  %v1049_v30 = vpop.xlane.xlu0 %1048 }
 0x863   :  { %1915 = vpow2.f32 %v1044_v28 }
 0x864   :  { %1917 = vlog2.f32 %v1051_v29 }
 0x865   :  { %1919 = vlog2.f32 %v1049_v30  ;;  %v1055_v31 = vpop.xlane.xlu1 %1054 }
 0x866   :  { %1921 = vlog2.f32 %v1055_v31  ;;  %v1053_v32 = vpop.xlane.xlu0 %1052 }
 0x867   :  { %1923 = vlog2.f32 %v1053_v32 }
 0x869   :  { %v1059_v33 = vpop.xlane.xlu1 %1058 }
 0x86a   :  { %1925 = vlog2.f32 %v1059_v33  ;;  %v1057_v34 = vpop.xlane.xlu0 %1056 }
 0x86b   :  { %1927 = vlog2.f32 %v1057_v34 }
 0x86c   :  { %v1914_v35 = vpop.eup %1913 }
 0x86d   :  { %v1916_v36 = vpop.eup %1915  ;;  %1062 = vadd.xlane.f32.xlu1 %v1914_v35 }
 0x86e   :  { %v1918_v37 = vpop.eup %1917  ;;  %1060 = vadd.xlane.f32.xlu0 %v1916_v36 }
 0x86f   :  { %v1920_v38 = vpop.eup %1919  ;;  %v1067_v39 = vmul.f32 0.6931472, %v1918_v37 }
 0x870   :  { %v1922_v40 = vpop.eup %1921  ;;  %v1065_v41 = vmul.f32 0.6931472, %v1920_v38 }
 0x871   :  { %v1924_v42 = vpop.eup %1923  ;;  %v1081_v43 = vsub.f32 %v2383_v2, %v1067_v39  ;;  %v1071_v44 = vmul.f32 0.6931472, %v1922_v40 }
 0x872   :  { %v1080_v45 = vsub.f32 %v2385_v3, %v1065_v41  ;;  %v1069_v46 = vmul.f32 0.6931472, %v1924_v42 }
 0x873   :  { %1089 = vst [vmem:[#allocation7 + $0x8] sm:$0xff] %v1081_v43  ;;  %v1083_v47 = vsub.f32 %v2388_v6, %v1071_v44 }
 0x874   :  { %v1926_v48 = vpop.eup %1925  ;;  %1088 = vst [vmem:[#allocation7] sm:$0xff] %v1080_v45  ;;  %v1082_v49 = vsub.f32 %v2391_v8, %v1069_v46 }
 0x875   :  { %v1928_v50 = vpop.eup %1927  ;;  %1091 = vst [vmem:[#allocation7 + $0x18] sm:$0xff] %v1083_v47  ;;  %v1075_v51 = vmul.f32 0.6931472, %v1926_v48 }
 0x876   :  { %1090 = vst [vmem:[#allocation7 + $0x10] sm:$0xff] %v1082_v49  ;;  %v1073_v52 = vmul.f32 0.6931472, %v1928_v50 }
 0x877   :  { %v1085_v53 = vsub.f32 %v2394_v12, %v1075_v51 }
 0x878   :  { %v1084_v54 = vsub.f32 %v2397_v14, %v1073_v52 }
 0x879   :  { %1093 = vst [vmem:[#allocation7 + $0x28] sm:$0xff] %v1085_v53 }
 0x87a   :  { %1092 = vst [vmem:[#allocation7 + $0x20] sm:$0xff] %v1084_v54 }
 0x87b   :  { %1988 = shalt.err (!%p1985_p6)
}
 0x87c   :  { %s1989_s28 = scalar_lea.hbm %s2455_s10, 1024 }
 0x87d   :  { %p1990_p7 = scmp.ne.s32.totalorder %s2455_s10, %s1989_s28  ;;  %p1993_p8 = scmp.lt.u32.totalorder %s1989_s28, %s2455_s10 }
 0x87f   :  { %p1995_p9 = pnand %p1993_p8, %p1990_p7 }
 0x881   :  { %1998 = shalt.err (!%p1995_p9)
}
 0x882   :  { %1119 = dma.vmem_to_hbm [thread:$0]  %s1114_s25, 1024, %s2455_s10, [#allocation9], %s2030_s23, %s2030_s23, %s2031_s24  }
 0x883   :  { %s2037_s13 = smov [#allocation7]  }
 0x884   :  { %s1101_s15 = sshll.u32 %s2037_s13, 4  ;;  %s1102_s15 = int_to_ptr.vmem [resolvable:$true] %s1101_s15 }
 0x885   :  { %s1999_s16 = scalar_lea.vmem %s1102_s15, 1024  ;;  %p2004_p11 = scmp.lt.s32.totalorder %s1102_s15, %s1102_s15 }
 0x886   :  { %p2000_p10 = scmp.ne.s32.totalorder %s1102_s15, %s1999_s16  ;;  %p2005_p12 = scmp.lt.s32.totalorder %s1999_s16, %s1999_s16 }
 0x888   :  { %p2006_p13 = por %p2005_p12, %p2004_p11 }
 0x88a   :  { %p2007_p0 = pnand %p2006_p13, %p2000_p10 }
 0x8fa   :  { %v1063_v55 = vpop.xlane.xlu1 %1062 }
 0x8fb   :  { %1929 = vlog2.f32 %v1063_v55  ;;  %v1061_v56 = vpop.xlane.xlu0 %1060 }
 0x8fc   :  { %1931 = vlog2.f32 %v1061_v56 }
 0x905   :  { %v1930_v57 = vpop.eup %1929 }
 0x906   :  { %v1932_v58 = vpop.eup %1931  ;;  %v1079_v60 = vmul.f32 0.6931472, %v1930_v57 }
 0x907   :  { %v1077_v61 = vmul.f32 0.6931472, %v1932_v58 }
 0x908   :  { %v1087_v62 = vsub.f32 %v2401_v0, %v1079_v60 }
 0x909   :  { %v1086_v63 = vsub.f32 %v2403_v26, %v1077_v61 }
 0x90a   :  { %1095 = vst [vmem:[#allocation7 + $0x38] sm:$0xff] %v1087_v62 }
 0x90b   :  { %1094 = vst [vmem:[#allocation7 + $0x30] sm:$0xff] %v1086_v63 }
 0x90c   :  { %2010 = shalt.err (!%p2007_p0)
}
 0x90d   :  { %s2011_s6 = scalar_lea.hbm %s2454_s9, 1024 }
 0x90e   :  { %p2012_p1 = scmp.ne.s32.totalorder %s2454_s9, %s2011_s6  ;;  %p2015_p2 = scmp.lt.u32.totalorder %s2011_s6, %s2454_s9 }
 0x910   :  { %p2017_p3 = pnand %p2015_p2, %p2012_p1 }
 0x912   :  { %2020 = shalt.err (!%p2017_p3)
}
 0x913   :  { %1107 = dma.vmem_to_hbm [thread:$0]  %s1102_s15, 1024, %s2454_s9, [#allocation4], %s2030_s23, %s2030_s23, %s2031_s24  }
 0x914   :  { %2025 = dma.done.wait [#allocation4], 1024  }
 0x915   :  { %2026 = vsyncadd [#allocation4], 4294966272 }
 0x916   :  { %2027 = dma.done.wait [#allocation9], 1024  }
 0x917   :  { %2028 = vsyncadd [#allocation9], 4294966272 }
 0x918   :  { %1126 = vsyncpa [#allocation3], 1 }
 0x919   :  { %1127 = vsyncpa [#allocation6], 1 }
 0x91a   :  { %1128 = vsyncpa [#allocation4], 1 }
 0x91b   :  { %1129 = vsyncpa [#allocation9], 1 }

</bundles_post_ra>
